<compile_context>
chip_gen: v6e
topology: v6e:2x2x1
jax: 0.10.0
libtpu: 0.0.40
codegen_flags: <defaults>
</compile_context>

<pallas_src>
import functools

import jax
import jax.numpy as jnp
from jax.experimental import pallas as pl
from jax.experimental.pallas import tpu as pltpu

EPS = 1e-5
_X_BLOCK_BYTES = 4 * 1024 * 1024       # streaming block byte budget (2-4 MiB sweet spot)
_FUSED_BLOCK_BYTES = 4 * 1024 * 1024   # f32-equivalent residency budget for fused path
_VMEM_LIMIT = 48 * 1024 * 1024         # safe on v5e/v6e (128 MiB) and v7x (64 MiB)


# --------------------------------------------------------------------------
# Tiling helpers
# --------------------------------------------------------------------------
def _c_tile_candidates(c, dtype):
    """Divisors of C that respect sublane packing (8 f32 / 16 bf16), descending."""
    sub = 16 if dtype == jnp.bfloat16 else 8
    if c % sub != 0:
        return [c]  # full-dim block is exempt from the (8,128) rule
    return sorted((d for d in range(sub, c + 1, sub) if c % d == 0), reverse=True)


def _choose_fused_c_tile(n, c, hw, budget_bytes, dtype):
    """Largest channel tile whose whole (N, c_tile, HW) f32 slab fits the budget.
    Prefer a tile giving >= 2 channel blocks (v7x megacore)."""
    cands = _c_tile_candidates(c, dtype)
    fits = lambda ct: n * ct * hw * 4 <= budget_bytes
    multi = [ct for ct in cands if ct * 2 <= c and fits(ct)]
    if multi:
        return multi[0]
    single = [ct for ct in cands if fits(ct)]
    return single[0] if single else None


def _pick_stream_c_tile(c, dtype):
    cands = _c_tile_candidates(c, dtype)
    multi = [ct for ct in cands if ct * 2 <= c]   # >=2 parallel channel blocks
    return multi[0] if multi else cands[0]


def _pick_stream_tiling(n, c_tile, hw, dtype_bytes, target_bytes):
    """Pick (n_blk, hw_tile). hw_tile is either the full HW (exempt dim) or a
    multiple of 128 <= HW (last block partial, handled by masking / dropped
    stores)."""
    n_blk = n if n * c_tile * 128 * dtype_bytes <= target_bytes else 1
    lanes = max(128, (target_bytes // (n_blk * c_tile * dtype_bytes)) // 128 * 128)
    if hw <= lanes:
        return n_blk, hw
    return n_blk, lanes


# --------------------------------------------------------------------------
# Kernels
# --------------------------------------------------------------------------
def _dsbn_fused_kernel(dom_ref, x_ref, g_ref, b_ref, o_ref, *, inv_count):
    # x_ref: (N, c_tile, HW) -- whole per-channel slab resident in VMEM.
    del dom_ref  # domain already folded into the gamma/beta index_map
    x = x_ref[...].astype(jnp.float32)
    # Two-pass (numerically stable) batch statistics per channel.
    mean = jnp.sum(jnp.sum(x, axis=2, keepdims=True), axis=0, keepdims=True) * inv_count
    d = x - mean
    var = jnp.sum(jnp.sum(d * d, axis=2, keepdims=True), axis=0, keepdims=True) * inv_count
    inv_std = jax.lax.rsqrt(var + EPS)
    g = g_ref[...].astype(jnp.float32)     # (1, c_tile, 1)
    b = b_ref[...].astype(jnp.float32)
    scale = g * inv_std
    shift = b - mean * scale
    o_ref[...] = (x * scale + shift).astype(o_ref.dtype)


def _dsbn_stats_kernel(dom_ref, x_ref, g_ref, b_ref,
                       scale_ref, shift_ref, sum_ref, sq_ref,
                       *, inv_count, hw_valid, hw_tile):
    # Grid: (c_blocks, n_blocks, hw_blocks); reduction over (n, hw).
    del dom_ref
    n = pl.program_id(1)
    m = pl.program_id(2)

    @pl.when((n == 0) & (m == 0))
    def _init():
        sum_ref[...] = jnp.zeros_like(sum_ref)
        sq_ref[...] = jnp.zeros_like(sq_ref)

    x = x_ref[...].astype(jnp.float32)               # (n_blk, c_tile, hw_tile)
    if hw_valid % hw_tile != 0:
        # Ragged last spatial tile: zero out-of-bounds lanes before reducing.
        lane = jax.lax.broadcasted_iota(jnp.int32, x.shape, x.ndim - 1)
        x = jnp.where((lane + m * hw_tile) < hw_valid, x, 0.0)

    sum_ref[...] += jnp.sum(jnp.sum(x, axis=2, keepdims=True), axis=0)      # (c_tile, 1)
    sq_ref[...] += jnp.sum(jnp.sum(x * x, axis=2, keepdims=True), axis=0)   # (c_tile, 1)

    @pl.when((n == pl.num_programs(1) - 1) & (m == pl.num_programs(2) - 1))
    def _finalize():
        mean = sum_ref[...] * inv_count
        # Clamp one-pass variance to avoid rsqrt(negative) under cancellation.
        var = jnp.maximum(sq_ref[...] * inv_count - mean * mean, 0.0)
        inv_std = jax.lax.rsqrt(var + EPS)
        g = g_ref[0].astype(jnp.float32)             # (c_tile, 1)
        b = b_ref[0].astype(jnp.float32)
        sc = g * inv_std
        scale_ref[...] = sc
        shift_ref[...] = b - mean * sc


def _dsbn_apply_kernel(x_ref, scale_ref, shift_ref, o_ref):
    # Pure streaming multiply-add: y = x * scale + shift (folded affine).
    x = x_ref[...].astype(jnp.float32)               # (n_blk, c_tile, hw_tile)
    y = x * scale_ref[...][None] + shift_ref[...][None]
    o_ref[...] = y.astype(o_ref.dtype)


# --------------------------------------------------------------------------
# Wrapper
# --------------------------------------------------------------------------
def domain_specific_batchnorm(x, domain_label, gammas, betas, *,
                              force_two_phase=False,
                              x_block_bytes=_X_BLOCK_BYTES):
    """x: (N, C, H, W); domain_label: int array (domain_label[0] selects BN);
    gammas/betas: (num_domains, C) per-domain affine parameters."""
    N, C, H, W = x.shape
    HW = H * W
    inv_count = 1.0 / (N * HW)
    dtype_bytes = jnp.dtype(x.dtype).itemsize

    x3 = x.reshape(N, C, HW)                         # free view, no transpose
    dom = jnp.asarray(domain_label, dtype=jnp.int32).reshape(-1)
    g3 = gammas[:, :, None]                          # (D, C, 1)
    b3 = betas[:, :, None]                           # (D, C, 1)

    # ---- Fused single-pass path (2 HBM passes) -----------------------------
    fused_ct = None if force_two_phase else _choose_fused_c_tile(
        N, C, HW, _FUSED_BLOCK_BYTES, x.dtype)
    if fused_ct is not None:
        x_spec = pl.BlockSpec((N, fused_ct, HW), lambda c, dom: (0, c, 0))
        gb_spec = pl.BlockSpec((1, fused_ct, 1), lambda c, dom: (dom[0], c, 0))
        out3 = pl.pallas_call(
            functools.partial(_dsbn_fused_kernel, inv_count=inv_count),
            out_shape=jax.ShapeDtypeStruct((N, C, HW), x.dtype),
            grid_spec=pltpu.PrefetchScalarGridSpec(
                num_scalar_prefetch=1,
                grid=(pl.cdiv(C, fused_ct),),
                in_specs=[x_spec, gb_spec, gb_spec],
                out_specs=x_spec),
            compiler_params=pltpu.CompilerParams(
                dimension_semantics=("parallel",),
                vmem_limit_bytes=_VMEM_LIMIT),
        )(dom, x3, g3, b3)
        return out3.reshape(N, C, H, W)

    # ---- Two-phase streaming path (3 HBM passes) ----------------------------
    c_tile = _pick_stream_c_tile(C, x.dtype)
    n_blk, hw_tile = _pick_stream_tiling(N, c_tile, HW, dtype_bytes, x_block_bytes)
    grid = (pl.cdiv(C, c_tile), pl.cdiv(N, n_blk), pl.cdiv(HW, hw_tile))

    # Phase 0: per-channel batch statistics -> folded scale/shift.
    x_spec_p = pl.BlockSpec((n_blk, c_tile, hw_tile), lambda c, n, m, dom: (n, c, m))
    gb_spec = pl.BlockSpec((1, c_tile, 1), lambda c, n, m, dom: (dom[0], c, 0))
    stat_spec_p = pl.BlockSpec((c_tile, 1), lambda c, n, m, dom: (c, 0))

    scale, shift = pl.pallas_call(
        functools.partial(_dsbn_stats_kernel, inv_count=inv_count,
                          hw_valid=HW, hw_tile=hw_tile),
        out_shape=(jax.ShapeDtypeStruct((C, 1), jnp.float32),
                   jax.ShapeDtypeStruct((C, 1), jnp.float32)),
        grid_spec=pltpu.PrefetchScalarGridSpec(
            num_scalar_prefetch=1,
            grid=grid,
            in_specs=[x_spec_p, gb_spec, gb_spec],
            out_specs=[stat_spec_p, stat_spec_p],
            scratch_shapes=[pltpu.VMEM((c_tile, 1), jnp.float32),
                            pltpu.VMEM((c_tile, 1), jnp.float32)]),
        compiler_params=pltpu.CompilerParams(
            dimension_semantics=("parallel", "arbitrary", "arbitrary"),
            vmem_limit_bytes=_VMEM_LIMIT),
    )(dom, x3, g3, b3)

    # Phase 1: normalize (y = x * scale + shift), fully pipelined, lane-dense.
    x_spec = pl.BlockSpec((n_blk, c_tile, hw_tile), lambda c, n, m: (n, c, m))
    stat_spec = pl.BlockSpec((c_tile, 1), lambda c, n, m: (c, 0))

    out3 = pl.pallas_call(
        _dsbn_apply_kernel,
        out_shape=jax.ShapeDtypeStruct((N, C, HW), x.dtype),
        grid=grid,
        in_specs=[x_spec, stat_spec, stat_spec],
        out_specs=x_spec,
        compiler_params=pltpu.CompilerParams(
            dimension_semantics=("parallel", "parallel", "arbitrary"),
            vmem_limit_bytes=_VMEM_LIMIT),
    )(x3, scale, shift)

    return out3.reshape(N, C, H, W)


# --------------------------------------------------------------------------
# Reference & test
# --------------------------------------------------------------------------
def _reference(x, domain_label, gammas, betas):
    d = domain_label[0]
    xf = x.astype(jnp.float32)
    mean = jnp.mean(xf, axis=(0, 2, 3), keepdims=True)
    var = jnp.mean((xf - mean) ** 2, axis=(0, 2, 3), keepdims=True)
    g = gammas[d][None, :, None, None]
    b = betas[d][None, :, None, None]
    return ((xf - mean) * jax.lax.rsqrt(var + EPS) * g + b).astype(x.dtype)


if __name__ == "__main__":
    key = jax.random.PRNGKey(0)
    N, C, H, W = 2, 4, 16, 16
    num_domains = 2

    kx, kg, kb = jax.random.split(key, 3)
    x = jax.random.normal(kx, (N, C, H, W), dtype=jnp.float32)
    gammas = 1.0 + 0.1 * jax.random.normal(kg, (num_domains, C), dtype=jnp.float32)
    betas = 0.1 * jax.random.normal(kb, (num_domains, C), dtype=jnp.float32)
    domain_label = jnp.array([1, 1], dtype=jnp.int32)

    ref = _reference(x, domain_label, gammas, betas)

    # Fused single-pass path (default for this size).
    out = jax.block_until_ready(
        domain_specific_batchnorm(x, domain_label, gammas, betas))
    assert out.shape == (N, C, H, W)
    assert jnp.max(jnp.abs(out - ref)) < 1e-4

    # Two-phase streaming path (forced).
    out2 = jax.block_until_ready(
        domain_specific_batchnorm(x, domain_label, gammas, betas,
                                  force_two_phase=True))
    assert jnp.max(jnp.abs(out2 - ref)) < 1e-4

    # Ragged-spatial case (HW not a multiple of 128): fused path (full-dim
    # block) and streaming path with a tiny block budget that forces a
    # partial, masked last spatial tile.
    xr = jax.random.normal(kx, (N, C, 15, 15), dtype=jnp.float32)
    refr = _reference(xr, domain_label, gammas, betas)
    outr = jax.block_until_ready(
        domain_specific_batchnorm(xr, domain_label, gammas, betas))
    assert jnp.max(jnp.abs(outr - refr)) < 1e-4
    outr2 = jax.block_until_ready(
        domain_specific_batchnorm(xr, domain_label, gammas, betas,
                                  force_two_phase=True, x_block_bytes=4096))
    assert jnp.max(jnp.abs(outr2 - refr)) < 1e-4

    print("KERNEL_OK")
</pallas_src>

<mosaic_0001>
module attributes {stable_mosaic.version = 11 : i64} {
  func.func @_dsbn_fused_kernel(%arg0: i32, %arg1: memref<2xi32, #tpu.memory_space<smem>>, %arg2: memref<2x4x256xf32, #tpu.memory_space<vmem>>, %arg3: memref<1x4x1xf32, #tpu.memory_space<vmem>>, %arg4: memref<1x4x1xf32, #tpu.memory_space<vmem>>, %arg5: memref<2x4x256xf32, #tpu.memory_space<vmem>>) attributes {dimension_semantics = [#tpu.dimension_semantics<parallel>], iteration_bounds = array<i64: 1>, scalar_prefetch = 1 : i64, scratch_operands = 0 : i64, tpu.core_type = #tpu.core_type<tc>, window_params = [{transform_indices = @transform_0, window_bounds = array<i64: 2, 4, 256>}, {transform_indices = @transform_1, window_bounds = array<i64: 1, 4, 1>}, {transform_indices = @transform_2, window_bounds = array<i64: 1, 4, 1>}, {transform_indices = @transform_3, window_bounds = array<i64: 2, 4, 256>}]} {
    %c0 = arith.constant 0 : index
    %c0_0 = arith.constant 0 : index
    %c0_1 = arith.constant 0 : index
    %0 = vector.load %arg2[%c0, %c0_0, %c0_1] : memref<2x4x256xf32, #tpu.memory_space<vmem>>, vector<2x4x256xf32>
    %cst = arith.constant dense<0.000000e+00> : vector<2x4xf32>
    %1 = vector.multi_reduction <add>, %0, %cst [2] : vector<2x4x256xf32> to vector<2x4xf32>
    %2 = vector.shape_cast %1 : vector<2x4xf32> to vector<2x4x1xf32>
    %cst_2 = arith.constant dense<0.000000e+00> : vector<4x1xf32>
    %3 = vector.multi_reduction <add>, %2, %cst_2 [0] : vector<2x4x1xf32> to vector<4x1xf32>
    %4 = vector.shape_cast %3 : vector<4x1xf32> to vector<1x4x1xf32>
    %cst_3 = arith.constant 0.001953125 : f32
    %5 = vector.broadcast %cst_3 : f32 to vector<1x4x1xf32>
    %6 = arith.mulf %4, %5 : vector<1x4x1xf32>
    %7 = vector.broadcast %6 : vector<1x4x1xf32> to vector<2x4x256xf32>
    %8 = arith.subf %0, %7 : vector<2x4x256xf32>
    %9 = arith.mulf %8, %8 : vector<2x4x256xf32>
    %cst_4 = arith.constant dense<0.000000e+00> : vector<2x4xf32>
    %10 = vector.multi_reduction <add>, %9, %cst_4 [2] : vector<2x4x256xf32> to vector<2x4xf32>
    %11 = vector.shape_cast %10 : vector<2x4xf32> to vector<2x4x1xf32>
    %cst_5 = arith.constant dense<0.000000e+00> : vector<4x1xf32>
    %12 = vector.multi_reduction <add>, %11, %cst_5 [0] : vector<2x4x1xf32> to vector<4x1xf32>
    %13 = vector.shape_cast %12 : vector<4x1xf32> to vector<1x4x1xf32>
    %cst_6 = arith.constant 0.001953125 : f32
    %14 = vector.broadcast %cst_6 : f32 to vector<1x4x1xf32>
    %15 = arith.mulf %13, %14 : vector<1x4x1xf32>
    %cst_7 = arith.constant 9.99999974E-6 : f32
    %16 = vector.broadcast %cst_7 : f32 to vector<1x4x1xf32>
    %17 = arith.addf %15, %16 : vector<1x4x1xf32>
    %18 = math.rsqrt %17 : vector<1x4x1xf32>
    %c0_8 = arith.constant 0 : index
    %c0_9 = arith.constant 0 : index
    %c0_10 = arith.constant 0 : index
    %19 = vector.load %arg3[%c0_8, %c0_9, %c0_10] : memref<1x4x1xf32, #tpu.memory_space<vmem>>, vector<1x4x1xf32>
    %c0_11 = arith.constant 0 : index
    %c0_12 = arith.constant 0 : index
    %c0_13 = arith.constant 0 : index
    %20 = vector.load %arg4[%c0_11, %c0_12, %c0_13] : memref<1x4x1xf32, #tpu.memory_space<vmem>>, vector<1x4x1xf32>
    %21 = arith.mulf %19, %18 : vector<1x4x1xf32>
    %22 = arith.mulf %6, %21 : vector<1x4x1xf32>
    %23 = arith.subf %20, %22 : vector<1x4x1xf32>
    %24 = vector.broadcast %21 : vector<1x4x1xf32> to vector<2x4x256xf32>
    %25 = arith.mulf %0, %24 : vector<2x4x256xf32>
    %26 = vector.broadcast %23 : vector<1x4x1xf32> to vector<2x4x256xf32>
    %27 = arith.addf %25, %26 : vector<2x4x256xf32>
    %c0_14 = arith.constant 0 : index
    %c0_15 = arith.constant 0 : index
    %c0_16 = arith.constant 0 : index
    %28 = vector.load %arg5[%c0_14, %c0_15, %c0_16] : memref<2x4x256xf32, #tpu.memory_space<vmem>>, vector<2x4x256xf32>
    tpu.vector_store %arg5[%c0_14, %c0_15, %c0_16], %27 {strides = array<i32>} : memref<2x4x256xf32, #tpu.memory_space<vmem>>, vector<2x4x256xf32>,
    return
  }
  func.func @transform_0(%arg0: i32, %arg1: memref<2xi32, #tpu.memory_space<smem>>) -> (i32, i32, i32) {
    %c0_i32 = arith.constant 0 : i32
    %c0_i32_0 = arith.constant 0 : i32
    %c0_i32_1 = arith.constant 0 : i32
    return %c0_i32, %arg0, %c0_i32_0 : i32, i32, i32
  }
  func.func @transform_1(%arg0: i32, %arg1: memref<2xi32, #tpu.memory_space<smem>>) -> (i32, i32, i32) {
    %c0 = arith.constant 0 : index
    %0 = memref.load %arg1[%c0] : memref<2xi32, #tpu.memory_space<smem>>
    %c0_i32 = arith.constant 0 : i32
    %c0_i32_0 = arith.constant 0 : i32
    return %0, %arg0, %c0_i32 : i32, i32, i32
  }
  func.func @transform_2(%arg0: i32, %arg1: memref<2xi32, #tpu.memory_space<smem>>) -> (i32, i32, i32) {
    %c0 = arith.constant 0 : index
    %0 = memref.load %arg1[%c0] : memref<2xi32, #tpu.memory_space<smem>>
    %c0_i32 = arith.constant 0 : i32
    %c0_i32_0 = arith.constant 0 : i32
    return %0, %arg0, %c0_i32 : i32, i32, i32
  }
  func.func @transform_3(%arg0: i32, %arg1: memref<2xi32, #tpu.memory_space<smem>>) -> (i32, i32, i32) {
    %c0_i32 = arith.constant 0 : i32
    %c0_i32_0 = arith.constant 0 : i32
    %c0_i32_1 = arith.constant 0 : i32
    return %c0_i32, %arg0, %c0_i32_0 : i32, i32, i32
  }
}

</mosaic_0001>

<bundles_post_ra>
// kernel: tpu_custom_call.1
= control target key start
LH: loop header
LB: loop body
LE: loop exit
PB: predicated region body
PF: predicated region fallthrough
CT: control target
= control target key end

     0   :  { %s302_s0 = inlined_call_operand.vmem [shape: s32[2], index: 0, kind: input, shape index: {}]   ;;  %s303_s1 = inlined_call_operand.vmem [shape: f32[2,4,256], index: 1, kind: input, shape index: {}]   ;;  %s304_s2 = inlined_call_operand.vmem [shape: f32[2,4,1], index: 2, kind: input, shape index: {}]   ;;  %s305_s3 = inlined_call_operand.vmem [shape: f32[2,4,1], index: 3, kind: input, shape index: {}]   ;;  %s306_s4 = inlined_call_operand.hbm [shape: f32[2,4,256], index: 4, kind: output, shape index: {}]  }
   0x1   :  { %s9_s17 = sshll.u32 %s302_s0, 4  ;;  %s10_s17 = int_to_ptr.vmem [resolvable:$true] %s9_s17 }
   0x2   :  { %s191_s18 = scalar_lea.vmem %s10_s17, 16  ;;  %p196_p1 = scmp.lt.s32.totalorder %s10_s17, %s10_s17 }
   0x3   :  { %p192_p0 = scmp.ne.s32.totalorder %s10_s17, %s191_s18  ;;  %p197_p2 = scmp.lt.s32.totalorder %s191_s18, %s191_s18 }
   0x5   :  { %p198_p3 = por %p197_p2, %p196_p1 }
   0x7   :  { %p199_p4 = pnand %p198_p3, %p192_p0 }
   0x9   :  { %202 = shalt.err (!%p199_p4)  }
   0xa   :  { %s227_s19 = smov [#allocation3]  }
   0xb   :  { %12 = dma.vmem_to_smem %s10_s17, 16, %s227_s19, [#allocation2] }
   0xc   :  { %223 = dma.done.wait [#allocation2], 16 }
   0xd   :  { %224 = vsyncadd [#allocation2], 4294967280 }
   0xe   :  { %14 = sfence }
   0xf   :  { %v264_v0 = vld [vmem:[%s303_s1] sm:$0xff]  ;;  %vm64_vm0 = vcmask 1043456   ;;  %v269_v1 = vld [vmem:[%s303_s1 + $0x8] sm:$0xff] }
  0x10   :  { %15 = vsyncpa [#allocation5], 0  ;;  %v60_v2 = vcombine.high %v264_v0, %v264_v0  ;;  %v65_v3 = vsel %vm64_vm0, %v264_v0, 0.0  ;;  %v61_v4 = vcombine.high %v269_v1, %v269_v1  ;;  %v70_v6 = vsel %vm64_vm0, %v269_v1, 0.0  ;;  %s44_s1 = sld [smem:[#allocation3]]  ;;  %s230_s30 = smov [#allocation4]  }
  0x11   :  { %v228_v10 = vmov 839922192   ;;  %v83_v12 = vlaneseq  ;;  %v229_v35 = vmov 0   ;;  %s154_s5 = sshll.u32 %s230_s30, 4  ;;  %s155_s5 = int_to_ptr.vmem [resolvable:$true] %s154_s5 }
  0x12   :  { %v66_v5 = vsel %vm64_vm0, %v60_v2, 0.0  ;;  %v71_v7 = vsel %vm64_vm0, %v61_v4, 0.0  ;;  %v81_v11 = vunpack.c.l.s4 %v228_v10  ;;  %185 = vset.pattern.permute.xlu0 %v229_v35  ;;  %186 = vset.pattern.permute.xlu1 %v229_v35  ;;  %p208_p7 = scmp.lt.s32.totalorder %s155_s5, %s155_s5 }
  0x13   :  { %v67_v8 = vadd.f32 %v66_v5, %v65_v3  ;;  %v72_v9 = vadd.f32 %v71_v7, %v70_v6  ;;  %v84_v15 = vshrl.u32 %v83_v12, 7 }
  0x14   :  { %v82_v14 = vunpack.c.0.s8 %v81_v11 }
  0x15   :  { %68 = vadd.xlane.f32.xlu0 %v67_v8 }
  0x16   :  { %v85_v19 = vsub.s32 %v82_v14, %v84_v15  ;;  %p45_p5 = scmp.lt.s32.totalorder %s44_s1, 1 }
  0x18   :  { %s308_s1 = smov (!%p45_p5, %s44_s1), 1 }
  0x19   :  { %73 = vadd.xlane.f32.xlu0 %v72_v9  ;;  %s177_s23 = sshll.u32 %s308_s1, 2 }
  0x1a   :  { %s48_s26 = scalar_lea.vmem %s304_s2, %s177_s23  ;;  %s54_s29 = scalar_lea.vmem %s305_s3, %s177_s23 }
  0x1b   :  { %v114_v43 = vld [vmem:[%s48_s26] sm:$0xf]  ;;  %s203_s2 = scalar_lea.vmem %s155_s5, 256 }
  0x1c   :  { %v115_v46 = vld [vmem:[%s54_s29] sm:$0xf]  ;;  %p204_p6 = scmp.ne.s32.totalorder %s155_s5, %s203_s2  ;;  %p209_p8 = scmp.lt.s32.totalorder %s203_s2, %s203_s2 }
  0x1e   :  { %p210_p9 = por %p209_p8, %p208_p7 }
  0x20   :  { %p211_p10 = pnand %p210_p9, %p204_p6 }
  0x9e   :  { %v69_v13 = vpop.xlane.xlu0 %68 }
  0x9f   :  { %v75_v17 = vsel %vm64_vm0, %v69_v13, 0.0 }
  0xa2   :  { %v74_v16 = vpop.xlane.xlu0 %73 }
  0xa3   :  { %v76_v18 = vsel %vm64_vm0, %v74_v16, 0.0 }
  0xa4   :  { %v77_v20 = vadd.f32 %v76_v18, %v75_v17 }
  0xa6   :  { %v78_v21 = vmul.f32 0.001953125, %v77_v20 }
  0xa8   :  { %v86_v22 = vrot.slane %v78_v21, %v85_v19 }
  0xaa   :  { %v88_v23 = vsub.f32 %v264_v0, %v86_v22  ;;  %v89_v24 = vsub.f32 %v269_v1, %v86_v22 }
  0xac   :  { %v90_v25 = vmul.f32 %v88_v23, %v88_v23  ;;  %v91_v26 = vmul.f32 %v89_v24, %v89_v24 }
  0xae   :  { %v94_v27 = vcombine.high %v90_v25, %v90_v25  ;;  %v95_v28 = vcombine.high %v91_v26, %v91_v26  ;;  %v98_v29 = vsel %vm64_vm0, %v90_v25, 0.0  ;;  %v103_v33 = vsel %vm64_vm0, %v91_v26, 0.0 }
  0xb0   :  { %v99_v30 = vsel %vm64_vm0, %v94_v27, 0.0  ;;  %v104_v32 = vsel %vm64_vm0, %v95_v28, 0.0 }
  0xb1   :  { %v100_v31 = vadd.f32 %v99_v30, %v98_v29  ;;  %v105_v34 = vadd.f32 %v104_v32, %v103_v33 }
  0xb3   :  { %101 = vadd.xlane.f32.xlu1 %v100_v31 }
  0xb7   :  { %106 = vadd.xlane.f32.xlu1 %v105_v34 }
 0x13c   :  { %v102_v36 = vpop.xlane.xlu1 %101 }
 0x13d   :  { %v108_v38 = vsel %vm64_vm0, %v102_v36, 0.0 }
 0x140   :  { %v107_v37 = vpop.xlane.xlu1 %106 }
 0x141   :  { %v109_v39 = vsel %vm64_vm0, %v107_v37, 0.0 }
 0x142   :  { %v110_v40 = vadd.f32 %v109_v39, %v108_v38 }
 0x144   :  { %v111_v41 = vmul.f32 0.001953125, %v110_v40 }
 0x146   :  { %v112_v42 = vadd.f32 1e-05, %v111_v41 }
 0x148   :  { %189 = vrsqrt.f32 %v112_v42 }
 0x155   :  { %v190_v44 = vpop.eup %189 }
 0x156   :  { %v116_v45 = vmul.f32 %v190_v44, %v114_v43 }
 0x158   :  { %121 = vperm.xlu0 %185, %v116_v45   ;;  %v117_v47 = vmul.f32 %v116_v45, %v78_v21 }
 0x15a   :  { %v118_v48 = vsub.f32 %v115_v46, %v117_v47 }
 0x15c   :  { %135 = vperm.xlu1 %186, %v118_v48  }
 0x1d3   :  { %v122_v49 = vpop.permute.xlu0 %121 }
 0x1d4   :  { %v129_v50 = vrot.slane %v122_v49, %v85_v19 }
 0x1d6   :  { %v131_v52 = vmul.f32 %v129_v50, %v264_v0  ;;  %v132_v53 = vmul.f32 %v129_v50, %v269_v1 }
 0x1d7   :  { %v136_v51 = vpop.permute.xlu1 %135 }
 0x1d8   :  { %v143_v54 = vrot.slane %v136_v51, %v85_v19 }
 0x1da   :  { %v145_v55 = vadd.f32 %v143_v54, %v131_v52  ;;  %v146_v56 = vadd.f32 %v143_v54, %v132_v53 }
 0x1dc   :  { %147 = vst [vmem:[#allocation4] sm:$0xff] %v145_v55  ;;  %148 = vst [vmem:[#allocation4 + $0x8] sm:$0xff] %v146_v56 }
 0x1dd   :  { %214 = shalt.err (!%p211_p10)
}
 0x1de   :  { %s231_s3 = smov 128   ;;  %s232_s6 = smov 8  }
 0x1df   :  { %160 = dma.vmem_to_hbm [thread:$0]  %s155_s5, 256, %s306_s4, [#allocation5], %s231_s3, %s231_s3, %s232_s6  }
 0x1e0   :  { %225 = dma.done.wait [#allocation5], 256  }
 0x1e1   :  { %226 = vsyncadd [#allocation5], 4294967040 }
 0x1e2   :  { %164 = vsyncpa [#allocation5], 1 }

</bundles_post_ra>
